<compile_context>
chip_gen: v7x
topology: tpu7x:2x2x1
jax: 0.10.0
libtpu: 0.0.40
codegen_flags: <defaults>
</compile_context>

<pallas_src>
import functools

import jax
import jax.numpy as jnp
from jax.experimental import pallas as pl
from jax.experimental.pallas import tpu as pltpu


def _sampler_kernel(logits_ref, gumbel_ref, out_ref, *, inv_T, n_nodes):
    # Gumbel-max keys: no softmax needed (argmax is invariant to the per-row
    # monotone normalization), and 1/T is baked in as a single VPU multiply.
    keys = logits_ref[...].astype(jnp.float32) * jnp.float32(inv_T) + gumbel_ref[...]

    # Row-wise argmax along the lane axis (first match on ties), done with a
    # cross-lane max + masked iota/min so it stays VPU/XLU friendly.
    kmax = jnp.max(keys, axis=-1, keepdims=True)
    col = jax.lax.broadcasted_iota(jnp.int32, keys.shape, 1)
    idx = jnp.min(
        jnp.where(keys == kmax, col, jnp.int32(n_nodes)), axis=-1, keepdims=True
    )
    out_ref[...] = idx.astype(jnp.int32)


def new_sampler(logits, key, *, T=10, n_samples=1, block_rows=None):
    """Pallas implementation of New_Sampler.forward.

    logits: (batch, n_nodes) float32 or bfloat16 (cast to f32 in-kernel)
    key:    jax PRNG key for the categorical draw
    returns: (batch, n_samples) int32
    """
    assert n_samples == 1, "New_Sampler uses n_samples=1"
    B, N = logits.shape

    # Pre-drawn Gumbel noise (see header note about in-kernel PRNG).
    gumbel = jax.random.gumbel(key, (B, N), dtype=jnp.float32)

    # --- pick a batch tile: multiple of 8 sublanes, sized so that
    # 2 inputs x 2 double-buffers x (TB*N*4B) stays well under the scoped
    # VMEM defaults on v5e (16 MiB) and under half of v7x's 64 MiB physical.
    if block_rows is None:
        vmem_budget = 8 << 20                       # bytes per single buffer
        rows = max(8, min(512, vmem_budget // (N * 4)))
        block_rows = (rows // 8) * 8
    TB = int(block_rows)
    TB = min(TB, max(8, ((B + 7) // 8) * 8))        # don't over-pad tiny batches
    TB = max(8, (TB // 8) * 8)

    # Pad batch to a multiple of the tile; padded rows are sliced off after.
    Bp = ((B + TB - 1) // TB) * TB
    if Bp != B:
        pad = Bp - B
        logits = jnp.pad(logits, ((0, pad), (0, 0)))
        gumbel = jnp.pad(gumbel, ((0, pad), (0, 0)))

    kernel = functools.partial(_sampler_kernel, inv_T=1.0 / float(T), n_nodes=N)

    out = pl.pallas_call(
        kernel,
        out_shape=jax.ShapeDtypeStruct((Bp, n_samples), jnp.int32),
        grid=(Bp // TB,),
        in_specs=[
            pl.BlockSpec((TB, N), lambda i: (i, 0)),   # logits tile
            pl.BlockSpec((TB, N), lambda i: (i, 0)),   # gumbel tile
        ],
        out_specs=pl.BlockSpec((TB, n_samples), lambda i: (i, 0)),
        compiler_params=pltpu.CompilerParams(
            dimension_semantics=("parallel",),          # shard tiles over cores
        ),
    )(logits, gumbel)

    return out[:B]


if __name__ == "__main__":
    key = jax.random.PRNGKey(0)
    k_logits, k_sample = jax.random.split(key)

    B, N = 8, 128            # batch, n_nodes (lane-aligned)
    logits = jax.random.normal(k_logits, (B, N), dtype=jnp.float32) * 5.0

    out = new_sampler(logits, k_sample, T=10, n_samples=1)
    out = jax.block_until_ready(out)

    assert out.shape == (B, 1)
    assert out.dtype == jnp.int32
    assert bool(jnp.all((out >= 0) & (out < N)))
    print("KERNEL_OK")
</pallas_src>

<mosaic_0001>
module attributes {stable_mosaic.version = 11 : i64} {
  func.func @_sampler_kernel(%arg0: i32, %arg1: memref<8x128xf32, #tpu.memory_space<vmem>>, %arg2: memref<8x128xf32, #tpu.memory_space<vmem>>, %arg3: memref<8x1xi32, #tpu.memory_space<vmem>>) attributes {dimension_semantics = [#tpu.dimension_semantics<parallel>], iteration_bounds = array<i64: 1>, scalar_prefetch = 0 : i64, scratch_operands = 0 : i64, tpu.core_type = #tpu.core_type<tc>, window_params = [{transform_indices = @transform_0, window_bounds = array<i64: 8, 128>}, {transform_indices = @transform_1, window_bounds = array<i64: 8, 128>}, {transform_indices = @transform_2, window_bounds = array<i64: 8, 1>}]} {
    %c0 = arith.constant 0 : index
    %c0_0 = arith.constant 0 : index
    %0 = vector.load %arg1[%c0, %c0_0] : memref<8x128xf32, #tpu.memory_space<vmem>>, vector<8x128xf32>
    %cst = arith.constant 1.000000e-01 : f32
    %1 = vector.broadcast %cst : f32 to vector<8x128xf32>
    %2 = arith.mulf %0, %1 : vector<8x128xf32>
    %c0_1 = arith.constant 0 : index
    %c0_2 = arith.constant 0 : index
    %3 = vector.load %arg2[%c0_1, %c0_2] : memref<8x128xf32, #tpu.memory_space<vmem>>, vector<8x128xf32>
    %4 = arith.addf %2, %3 : vector<8x128xf32>
    %cst_3 = arith.constant dense<0xFF800000> : vector<8xf32>
    %5 = vector.multi_reduction <maximumf>, %4, %cst_3 [1] : vector<8x128xf32> to vector<8xf32>
    %6 = vector.shape_cast %5 : vector<8xf32> to vector<8x1xf32>
    %7 = tpu.iota {dimensions = array<i32: 1>} : vector<8x128xi32>
    %8 = vector.broadcast %6 : vector<8x1xf32> to vector<8x128xf32>
    %9 = arith.cmpf oeq, %4, %8 : vector<8x128xf32>
    %c128_i32 = arith.constant 128 : i32
    %10 = vector.broadcast %c128_i32 : i32 to vector<8x128xi32>
    %11 = arith.select %9, %7, %10 : vector<8x128xi1>, vector<8x128xi32>
    %cst_4 = arith.constant dense<2147483647> : vector<8xi32>
    %12 = vector.multi_reduction <minsi>, %11, %cst_4 [1] : vector<8x128xi32> to vector<8xi32>
    %13 = vector.shape_cast %12 : vector<8xi32> to vector<8x1xi32>
    %c0_5 = arith.constant 0 : index
    %c0_6 = arith.constant 0 : index
    %14 = vector.load %arg3[%c0_5, %c0_6] : memref<8x1xi32, #tpu.memory_space<vmem>>, vector<8x1xi32>
    tpu.vector_store %arg3[%c0_5, %c0_6], %13 {strides = array<i32>} : memref<8x1xi32, #tpu.memory_space<vmem>>, vector<8x1xi32>,
    return
  }
  func.func @transform_0(%arg0: i32) -> (i32, i32) {
    %c0_i32 = arith.constant 0 : i32
    %c0_i32_0 = arith.constant 0 : i32
    return %arg0, %c0_i32 : i32, i32
  }
  func.func @transform_1(%arg0: i32) -> (i32, i32) {
    %c0_i32 = arith.constant 0 : i32
    %c0_i32_0 = arith.constant 0 : i32
    return %arg0, %c0_i32 : i32, i32
  }
  func.func @transform_2(%arg0: i32) -> (i32, i32) {
    %c0_i32 = arith.constant 0 : i32
    %c0_i32_0 = arith.constant 0 : i32
    return %arg0, %c0_i32 : i32, i32
  }
}

</mosaic_0001>

<bundles_post_ra>
// kernel: tpu_custom_call.1
= control target key start
LH: loop header
LB: loop body
LE: loop exit
PB: predicated region body
PF: predicated region fallthrough
CT: control target
= control target key end

     0   :  { %7 = vsyncpa [#allocation3], 0  ;;  %s161_s0 = inlined_call_operand.hbm [shape: f32[8,128], index: 0, kind: input, shape index: {}]   ;;  %s162_s1 = inlined_call_operand.hbm [shape: f32[8,128], index: 1, kind: input, shape index: {}]   ;;  %s163_s2 = inlined_call_operand.vmem [shape: s32[8,1], index: 2, kind: output, shape index: {}]  }
   0x1   :  { %8 = vsyncpa [#allocation5], 0  ;;  %s117_s9 = smov [#allocation2]   ;;  %s118_s11 = smov [#allocation4]  }
   0x2   :  { %s15_s10 = sshll.u32 %s117_s9, 4  ;;  %s25_s12 = sshll.u32 %s118_s11, 4  ;;  %s16_s10 = int_to_ptr.vmem [resolvable:$true] %s15_s10  ;;  %s26_s12 = int_to_ptr.vmem [resolvable:$true] %s25_s12 }
   0x3   :  { %s69_s15 = scalar_lea.hbm %s161_s0, 128 }
   0x4   :  { %p70_p0 = scmp.ne.s32.totalorder %s161_s0, %s69_s15  ;;  %p73_p1 = scmp.lt.u32.totalorder %s69_s15, %s161_s0 }
   0x6   :  { %p75_p2 = pnand %p73_p1, %p70_p0 }
   0x8   :  { %78 = shalt.err (!%p75_p2)
}
   0x9   :  { %s79_s20 = scalar_lea.vmem %s16_s10, 128  ;;  %p84_p4 = scmp.lt.s32.totalorder %s16_s10, %s16_s10 }
   0xa   :  { %p80_p3 = scmp.ne.s32.totalorder %s16_s10, %s79_s20  ;;  %p85_p5 = scmp.lt.s32.totalorder %s79_s20, %s79_s20 }
   0xc   :  { %p86_p6 = por %p85_p5, %p84_p4 }
   0xe   :  { %p87_p7 = pnand %p86_p6, %p80_p3 }
  0x10   :  { %90 = shalt.err (!%p87_p7)
}
  0x11   :  { %18 = dma.hbm_to_vmem [thread:$0]  %s161_s0, 128, %s16_s10, [#allocation3]  }
  0x12   :  { %s91_s25 = scalar_lea.hbm %s162_s1, 128 }
  0x13   :  { %p92_p8 = scmp.ne.s32.totalorder %s162_s1, %s91_s25  ;;  %p95_p9 = scmp.lt.u32.totalorder %s91_s25, %s162_s1 }
  0x15   :  { %p97_p10 = pnand %p95_p9, %p92_p8 }
  0x17   :  { %100 = shalt.err (!%p97_p10)
}
  0x18   :  { %s101_s30 = scalar_lea.vmem %s26_s12, 128  ;;  %p106_p12 = scmp.lt.s32.totalorder %s26_s12, %s26_s12 }
  0x19   :  { %p102_p11 = scmp.ne.s32.totalorder %s26_s12, %s101_s30  ;;  %p107_p13 = scmp.lt.s32.totalorder %s101_s30, %s101_s30 }
  0x1b   :  { %p108_p0 = por %p107_p13, %p106_p12 }
  0x1d   :  { %p109_p1 = pnand %p108_p0, %p102_p11 }
  0x1f   :  { %112 = shalt.err (!%p109_p1)
}
  0x20   :  { %28 = dma.hbm_to_vmem [thread:$0]  %s162_s1, 128, %s26_s12, [#allocation5]  }
  0x21   :  { %113 = dma.done.wait [#allocation3], 128  }
  0x22   :  { %114 = vsyncadd [#allocation3], 4294967168 }
  0x23   :  { %115 = dma.done.wait [#allocation5], 128  }
  0x24   :  { %116 = vsyncadd [#allocation5], 4294967168  ;;  %v35_v0 = vld [vmem:[#allocation2] sm:$0xff]  ;;  %v37_v1 = vld [vmem:[#allocation4] sm:$0xff]  ;;  %v41_v4 = vlaneseq  ;;  %vm59_vm2 = vcmask 7168  }
  0x25   :  { %v36_v2 = vmul.f32 0.1, %v35_v0 }
  0x26   :  { %v42_v5 = vand.u32 127, %v41_v4 }
  0x27   :  { %v38_v3 = vadd.f32 %v37_v1, %v36_v2 }
  0x29   :  { %39 = vmax.xlane.f32.xlu0 %v38_v3 }
  0xb6   :  { %v40_v6 = vpop.xlane.xlu0 %39 }
  0xb7   :  { %vm43_vm0 = vcmp.eq.f32.partialorder %v38_v3, %v40_v6 }
  0xb8   :  { %v44_v7 = vsel %vm43_vm0, %v42_v5, 128 }
  0xb9   :  { %v46_v8 = vshra.s32 %v44_v7, 16  ;;  %v45_v10 = vand.u32 65535, %v44_v7 }
  0xbb   :  { %v48_v9 = vcvt.s32.f32 %v46_v8  ;;  %v47_v12 = vcvt.s32.f32 %v45_v10 }
  0xbd   :  { %49 = vmin.xlane.f32.xlu0 %v48_v9 }
 0x14a   :  { %v50_v11 = vpop.xlane.xlu0 %49 }
 0x14b   :  { %vm51_vm1 = vcmp.eq.f32.partialorder %v48_v9, %v50_v11  ;;  %v56_v14 = vcvt.f32.s32 %v50_v11 }
 0x14c   :  { %v52_v13 = vsel %vm51_vm1, %v47_v12, inf }
 0x14d   :  { %53 = vmin.xlane.f32.xlu1 %v52_v13  ;;  %v57_v16 = vshll.u32 %v56_v14, 16 }
 0x1da   :  { %v54_v15 = vpop.xlane.xlu1 %53 }
 0x1db   :  { %v55_v17 = vcvt.f32.s32 %v54_v15 }
 0x1dd   :  { %v58_v18 = vadd.s32 %v57_v16, %v55_v17 }
 0x1df   :  { %60 = vst.msk [vmem:[%s163_s2] sm:$0xff] %vm59_vm2, %v58_v18 }
 0x1e0   :  { %65 = vsyncpa [#allocation3], 1 }
 0x1e1   :  { %66 = vsyncpa [#allocation5], 1 }

</bundles_post_ra>
